<compile_context>
chip_gen: v6e
topology: v6e:2x2x1
jax: 0.10.0
libtpu: 0.0.40
codegen_flags: <defaults>
</compile_context>

<pallas_src>
import math

import jax
import jax.numpy as jnp
from jax.experimental import pallas as pl
from jax.experimental.pallas import tpu as pltpu


# ----------------------------- Pallas kernel ---------------------------------

def _decode_kernel(h_ref, w2_ref, b2_ref, var_ref, xmean_ref, xvar_ref):
    # Single MXU matmul per lane tile: bf16 operands, f32 accumulation.
    acc = jnp.dot(h_ref[...], w2_ref[...], preferred_element_type=jnp.float32)
    xmean_ref[...] = (acc + b2_ref[...]).astype(xmean_ref.dtype)
    # x_var = dec_var * scale^2 broadcast over batch, fused into the same
    # pipeline so the full (B, D) variance field is written exactly once.
    xvar_ref[...] = jnp.broadcast_to(var_ref[...], xvar_ref.shape).astype(xvar_ref.dtype)


# ------------------------------ tiling logic ----------------------------------

def _vmem_budget_bytes():
    """Generation-aware usable-VMEM budget for tile sizing."""
    cap = 64 << 20                       # conservative fallback (v7x-class)
    try:
        cap = pltpu.get_tpu_info().vmem_capacity_bytes
    except Exception:
        pass
    if cap <= (64 << 20):                # v7x: 64 MiB/TC -> leave compiler headroom
        return 48 << 20
    return min(cap - (32 << 20), 100 << 20)   # 128 MiB parts (v5e/v6e): ~96 MiB


def _choose_tile_d(D_pad, hidden, B, vmem_budget):
    """Largest lane tile (multiple of 128, divisor of D_pad) within the budget.

    Per-lane footprint (double-buffered W2(bf16)/b2/var_row/x_mean/x_var(f32)):
        2 * (2*hidden + 4 + 4 + 4*B + 4*B) bytes.
    The kernel is pure streaming: take the biggest tile the budget allows
    (amortizes the ~600-cycle per-grid-step overhead), cap at 32k lanes, and
    keep >= 2 grid steps when D_pad >= 256 so the "parallel" grid axis can be
    sharded across both v7x TensorCores.
    """
    per_lane = 2 * (2 * hidden + 8 * B + 8)
    cap = (vmem_budget // per_lane) // 128 * 128
    cap = max(128, min(cap, 32 * 1024, D_pad))
    if D_pad >= 256:
        cap = min(cap, max(128, (D_pad // 2) // 128 * 128))
    # largest multiple-of-128 divisor of D_pad that does not exceed cap
    m = D_pad // 128
    best = 1
    for d in range(1, m + 1):
        if m % d == 0 and 128 * d <= cap:
            best = d
    return 128 * best


# --------------------------------- wrapper -------------------------------------

def var_decoder_forward(mu, z, params, shape_x, *, tile_d=None, out_dtype=jnp.float32):
    """Returns (x_mean, x_var), each of shape (B, *shape_x).

    For large-batch deployments (B >~ 2*hidden) pass out_dtype=jnp.bfloat16 to
    halve the dominant x_mean store stream (accumulation stays f32 in-kernel).
    """
    B = mu.shape[0]
    hidden = params["w1"].shape[1]
    D = math.prod(shape_x)
    D_pad = params["w2"].shape[1]            # columns padded to a multiple of 128
    assert D_pad % 128 == 0 and D_pad >= D

    # Layer-1 of decode_mean is independent of the output tile -> compute once
    # here (tiny XLA matmul), cast to bf16, and feed the result to the kernel.
    mz = jnp.concatenate([mu, z], axis=1)
    h = jnp.maximum(mz @ params["w1"] + params["b1"], 0.0).astype(jnp.bfloat16)

    budget = _vmem_budget_bytes()
    if tile_d is None:
        tile_d = _choose_tile_d(D_pad, hidden, B, budget)
    assert tile_d % 128 == 0 and D_pad % tile_d == 0
    grid = (D_pad // tile_d,)

    # VMEM limit: double-buffered working set (+ resident h), clamped to the
    # generation-aware budget; never below the 32 MiB scoped default.
    working = 2 * (2 * hidden + 8 * B + 8) * tile_d + B * hidden * 2
    vmem_limit = int(min(max(2 * working, 32 << 20), budget))

    x_mean_flat, x_var_flat = pl.pallas_call(
        _decode_kernel,
        grid=grid,
        in_specs=[
            pl.BlockSpec((B, hidden), lambda j: (0, 0)),        # h (resident, bf16)
            pl.BlockSpec((hidden, tile_d), lambda j: (0, j)),   # W2 (streamed, bf16)
            pl.BlockSpec((1, tile_d), lambda j: (0, j)),        # b2 (f32)
            pl.BlockSpec((1, tile_d), lambda j: (0, j)),        # dec_var*scale^2 row (f32)
        ],
        out_specs=[
            pl.BlockSpec((B, tile_d), lambda j: (0, j)),        # x_mean (flat)
            pl.BlockSpec((B, tile_d), lambda j: (0, j)),        # x_var  (flat)
        ],
        out_shape=(
            jax.ShapeDtypeStruct((B, D_pad), out_dtype),
            jax.ShapeDtypeStruct((B, D_pad), jnp.float32),
        ),
        compiler_params=pltpu.CompilerParams(
            dimension_semantics=("parallel",),   # shard lane tiles across TCs on v7x
            vmem_limit_bytes=vmem_limit),
    )(h, params["w2"], params["b2"], params["var_row"])

    x_mean = x_mean_flat[:, :D].reshape((B, *shape_x))
    x_var = x_var_flat[:, :D].reshape((B, *shape_x))
    return x_mean, x_var


# -------------------------- deterministic init --------------------------------

def make_params(key, dim_mu, dim_z, hidden, shape_x, data_mean, data_std):
    D = math.prod(shape_x)
    D_pad = ((D + 127) // 128) * 128     # pad columns -> lane-dense, unmasked stores
    k1, k2, k3, k4 = jax.random.split(key, 4)

    # decode_mean MLP weights (layer-1 weight pre-concatenated over [mu, z]).
    w1 = jax.random.normal(k1, (dim_mu + dim_z, hidden), jnp.float32) * 0.1
    b1 = jnp.zeros((1, hidden), jnp.float32)
    w2 = jax.random.normal(k2, (hidden, D), jnp.float32) * 0.1
    b2 = jnp.zeros((1, D), jnp.float32)

    # log-normal variance parameters (mirrors __init__ + resample_params)
    dec_logvar_mean = jnp.full(shape_x, -5.0, jnp.float32)
    dec_logvar_logvar = jnp.full(shape_x, 1.0, jnp.float32)
    stdnorm = jax.random.normal(k3, shape_x, jnp.float32)
    dec_logvar = dec_logvar_mean + stdnorm * jnp.exp(0.5 * dec_logvar_logvar)
    dec_var = jnp.exp(dec_logvar)                                 # (*shape_x,)

    scale = data_std * jnp.ones((1, *shape_x), jnp.float32)       # (1, *shape_x)
    # offset (data_mean) is stored by the module but unused in forward()
    _offset = data_mean * jnp.ones((1, *shape_x), jnp.float32)

    # dec_var * scale^2 is static per forward -> precompute the (1, D) row once.
    var_row = (dec_var[None] * scale ** 2).reshape(1, D)

    pad = D_pad - D
    if pad:
        w2 = jnp.pad(w2, ((0, 0), (0, pad)))
        b2 = jnp.pad(b2, ((0, 0), (0, pad)))
        var_row = jnp.pad(var_row, ((0, 0), (0, pad)))

    return {
        "w1": w1, "b1": b1,
        "w2": w2.astype(jnp.bfloat16),   # bf16 stream: deliberate precision trade
        "b2": b2,
        "var_row": var_row,
    }, k4


# ------------------------------- reference ------------------------------------

def reference_forward(mu, z, params, shape_x):
    B = mu.shape[0]
    D = math.prod(shape_x)
    mz = jnp.concatenate([mu, z], axis=1)
    h = jnp.maximum(mz @ params["w1"] + params["b1"], 0.0).astype(jnp.bfloat16)
    x_mean = (jnp.dot(h, params["w2"], preferred_element_type=jnp.float32)
              + params["b2"])[:, :D].reshape((B, *shape_x))
    x_var = jnp.broadcast_to(params["var_row"][:, :D], (B, D)).reshape((B, *shape_x))
    return x_mean, x_var


# --------------------------------- main ----------------------------------------

if __name__ == "__main__":
    # small config consistent with the module: shape_x = (C, H, W)
    dim_mu, dim_z, hidden = 4, 8, 32
    shape_x = (1, 16, 16)          # D = 256 -> two 128-lane tiles (>= 2 grid steps)
    n_batch = 2
    data_mean, data_std = 0.5, 2.0

    key = jax.random.PRNGKey(0)
    params, key = make_params(key, dim_mu, dim_z, hidden, shape_x,
                              data_mean, data_std)
    kmu, kz = jax.random.split(key)
    mu = jax.random.normal(kmu, (n_batch, dim_mu), jnp.float32)
    z = jax.random.normal(kz, (n_batch, dim_z), jnp.float32)

    x_mean, x_var = jax.block_until_ready(
        var_decoder_forward(mu, z, params, shape_x))

    x_mean_ref, x_var_ref = reference_forward(mu, z, params, shape_x)

    assert x_mean.shape == (n_batch, *shape_x)
    assert x_var.shape == (n_batch, *shape_x)
    assert jnp.allclose(x_mean, x_mean_ref, atol=2e-3, rtol=2e-3)
    assert jnp.allclose(x_var, x_var_ref, atol=1e-6, rtol=1e-6)

    # TODO(synk): decode_mean_net is dependency-injected in the original code;
    # implemented here as a deterministic 2-layer MLP decoder stand-in.
    print("KERNEL_OK")
</pallas_src>

<mosaic_0001>
module attributes {stable_mosaic.version = 11 : i64} {
  func.func @_decode_kernel(%arg0: i32, %arg1: memref<2x32xbf16, #tpu.memory_space<vmem>>, %arg2: memref<32x128xbf16, #tpu.memory_space<vmem>>, %arg3: memref<1x128xf32, #tpu.memory_space<vmem>>, %arg4: memref<1x128xf32, #tpu.memory_space<vmem>>, %arg5: memref<2x128xf32, #tpu.memory_space<vmem>>, %arg6: memref<2x128xf32, #tpu.memory_space<vmem>>) attributes {dimension_semantics = [#tpu.dimension_semantics<parallel>], iteration_bounds = array<i64: 2>, scalar_prefetch = 0 : i64, scratch_operands = 0 : i64, tpu.core_type = #tpu.core_type<tc>, window_params = [{pipeline_mode = #tpu.pipeline_mode<synchronous>, transform_indices = @transform_0, window_bounds = array<i64: 2, 32>}, {transform_indices = @transform_1, window_bounds = array<i64: 32, 128>}, {transform_indices = @transform_2, window_bounds = array<i64: 1, 128>}, {transform_indices = @transform_3, window_bounds = array<i64: 1, 128>}, {transform_indices = @transform_4, window_bounds = array<i64: 2, 128>}, {transform_indices = @transform_5, window_bounds = array<i64: 2, 128>}]} {
    %c0 = arith.constant 0 : index
    %c0_0 = arith.constant 0 : index
    %0 = vector.load %arg1[%c0, %c0_0] : memref<2x32xbf16, #tpu.memory_space<vmem>>, vector<2x32xbf16>
    %c0_1 = arith.constant 0 : index
    %c0_2 = arith.constant 0 : index
    %1 = vector.load %arg2[%c0_1, %c0_2] : memref<32x128xbf16, #tpu.memory_space<vmem>>, vector<32x128xbf16>
    %cst = arith.constant dense<0.000000e+00> : vector<2x128xf32>
    %2 = tpu.matmul %0, %1, %cst {dimension_numbers = #tpu.dot_dimension_numbers<[1], [0], [0], [1], [0, 0, 1, 1], [], []>} : vector<2x32xbf16>, vector<32x128xbf16>, vector<2x128xf32> -> vector<2x128xf32>
    %c0_3 = arith.constant 0 : index
    %c0_4 = arith.constant 0 : index
    %3 = vector.load %arg3[%c0_3, %c0_4] : memref<1x128xf32, #tpu.memory_space<vmem>>, vector<1x128xf32>
    %4 = vector.broadcast %3 : vector<1x128xf32> to vector<2x128xf32>
    %5 = arith.addf %2, %4 : vector<2x128xf32>
    %c0_5 = arith.constant 0 : index
    %c0_6 = arith.constant 0 : index
    %6 = vector.load %arg5[%c0_5, %c0_6] : memref<2x128xf32, #tpu.memory_space<vmem>>, vector<2x128xf32>
    tpu.vector_store %arg5[%c0_5, %c0_6], %5 {strides = array<i32>} : memref<2x128xf32, #tpu.memory_space<vmem>>, vector<2x128xf32>,
    %c0_7 = arith.constant 0 : index
    %c0_8 = arith.constant 0 : index
    %7 = vector.load %arg4[%c0_7, %c0_8] : memref<1x128xf32, #tpu.memory_space<vmem>>, vector<1x128xf32>
    %8 = vector.shape_cast %7 : vector<1x128xf32> to vector<1x128xf32>
    %9 = vector.broadcast %8 : vector<1x128xf32> to vector<2x128xf32>
    %c0_9 = arith.constant 0 : index
    %c0_10 = arith.constant 0 : index
    %10 = vector.load %arg6[%c0_9, %c0_10] : memref<2x128xf32, #tpu.memory_space<vmem>>, vector<2x128xf32>
    tpu.vector_store %arg6[%c0_9, %c0_10], %9 {strides = array<i32>} : memref<2x128xf32, #tpu.memory_space<vmem>>, vector<2x128xf32>,
    return
  }
  func.func @transform_0(%arg0: i32) -> (i32, i32) {
    %c0_i32 = arith.constant 0 : i32
    %c0_i32_0 = arith.constant 0 : i32
    %c0_i32_1 = arith.constant 0 : i32
    return %c0_i32, %c0_i32_0 : i32, i32
  }
  func.func @transform_1(%arg0: i32) -> (i32, i32) {
    %c0_i32 = arith.constant 0 : i32
    %c0_i32_0 = arith.constant 0 : i32
    return %c0_i32, %arg0 : i32, i32
  }
  func.func @transform_2(%arg0: i32) -> (i32, i32) {
    %c0_i32 = arith.constant 0 : i32
    %c0_i32_0 = arith.constant 0 : i32
    return %c0_i32, %arg0 : i32, i32
  }
  func.func @transform_3(%arg0: i32) -> (i32, i32) {
    %c0_i32 = arith.constant 0 : i32
    %c0_i32_0 = arith.constant 0 : i32
    return %c0_i32, %arg0 : i32, i32
  }
  func.func @transform_4(%arg0: i32) -> (i32, i32) {
    %c0_i32 = arith.constant 0 : i32
    %c0_i32_0 = arith.constant 0 : i32
    return %c0_i32, %arg0 : i32, i32
  }
  func.func @transform_5(%arg0: i32) -> (i32, i32) {
    %c0_i32 = arith.constant 0 : i32
    %c0_i32_0 = arith.constant 0 : i32
    return %c0_i32, %arg0 : i32, i32
  }
}

</mosaic_0001>

<bundles_post_ra>
// kernel: tpu_custom_call.1
= control target key start
LH: loop header
LB: loop body
LE: loop exit
PB: predicated region body
PF: predicated region fallthrough
CT: control target
= control target key end

     0   :  { %11 = vsyncpa [#allocation3], 0  ;;  %s1047_s0 = inlined_call_operand.hbm [shape: bf16[2,32], index: 0, kind: input, shape index: {}]   ;;  %s1048_s1 = inlined_call_operand.hbm [shape: bf16[32,256], index: 1, kind: input, shape index: {}]   ;;  %s1049_s2 = inlined_call_operand.vmem [shape: f32[1,256], index: 2, kind: input, shape index: {}]   ;;  %s1050_s3 = inlined_call_operand.vmem [shape: f32[1,256], index: 3, kind: input, shape index: {}]   ;;  %s1051_s4 = inlined_call_operand.hbm [shape: f32[2,256], index: 4, kind: output, shape index: {0}]   ;;  %s1052_s5 = inlined_call_operand.hbm [shape: f32[2,256], index: 5, kind: output, shape index: {1}]  }
   0x1   :  { %12 = vsyncpa [#allocation6], 0 }
   0x2   :  { %14 = vsyncpa [#allocation6 + $0x1], 0 }
   0x3   :  { %15 = vsyncpa [#allocation4], 0 }
   0x4   :  { %17 = vsyncpa [#allocation4 + $0x1], 0 }
   0x5   :  { %18 = vsyncpa [#allocation9], 0 }
   0x6   :  { %20 = vsyncpa [#allocation9 + $0x1], 0  ;;  %s831_s18 = smov 0   ;;  %s833_s19 = smov 0  }
   0x7   :  { %s835_s20 = smov 0   ;;  %s837_s21 = smov 0  }
   0x8 LB: > { %s852_s22 = sadd.s32 4294967295, %s790_s21   ;;  %s536_s23 = sadd.s32 4294967294, %s790_s21   ;;  %s790_s21 = sphi %s837_s21, %s1077_s21   ;;  %s786_s20 = sphi %s835_s20, %s1076_s20   ;;  %s782_s19 = sphi %s833_s19, %s1075_s19   ;;  %s778_s18 = sphi %s831_s18, %s1074_s18  }
   0x9   : > { %s856_s24 = sadd.s32 1, %s790_s21   ;;  %s54_s25 = sadd.s32 1, %s786_s20 }
   0xa   : > { %s51_s26 = ssub.s32 %s790_s21, %s856_s24  ;;  %p61_p0 = scmp.ne.s32.totalorder %s786_s20, %s782_s19 }
   0xb   : > { %p52_p1 = scmp.eq.s32.totalorder %s51_s26, 0  ;;  %p62_p2 = scmp.eq.s32.totalorder %s790_s21, 0 }
   0xc   : > { %p67_p3 = scmp.ne.s32.totalorder %s782_s19, %s778_s18  ;;  %p1053_p4 = scmp.eq.s32.totalorder %s852_s22, 0 }
   0xd   : > { %s868_s27 = scalar_select %p52_p1, %s786_s20, %s54_s25  }
   0xe   : > { %p870_p5 = por %p62_p2, %p61_p0  ;;  %p876_p6 = por %p1053_p4, %p67_p3 }
   0xf   : > { %1057 = sst [smem:[#allocation14_spill]] %s868_s27  ;;  %p143_p7 = scmp.eq.s32.totalorder %s852_s22, 1 }
  0x10   : > { %s1059_s29 = scalar_select %p876_p6, 1, 0 }
  0x11   : > { %p149_p8 = scmp.eq.s32.totalorder %s536_s23, 1  ;;  %p537_p9 = scmp.ge.s32.totalorder %s790_s21, 1 }
  0x12   : > { %p182_p10 = scmp.lt.s32.totalorder %s790_s21, 3  ;;  %p883_p11 = por %p143_p7, %p61_p0 }
  0x13   : > { %p887_p12 = por %p149_p8, %p67_p3  ;;  %s792_s8 = smov [#allocation2]  }
  0x14   : > { %s1060_s30 = scalar_select %p883_p11, 1, 0 }
  0x15   : > { %s1061_s6 = scalar_select %p887_p12, 1, 0 }
  0x16   : > { %p891_p13 = pnand %p537_p9, %p182_p10  ;;  %s195_s9 = sshll.u32 %s792_s8, 4  ;;  %s196_s9 = int_to_ptr.vmem [resolvable:$true] %s195_s9 }
  0x17   : > { %p595_p4 = scmp.lt.s32.totalorder %s790_s21, 2  ;;  %p1063_p0 = scmp.eq.s32.totalorder %s852_s22, 0 }
  0x18   : > { %s1062_s7 = scalar_select %p891_p13, 1, 0 }
  0x19   : > { %p579_p2 = pneg %p891_p13  ;;  %s206_s11 = sand.u32 1, %s786_s20  }
  0x1a   : > { %p908_p3 = pnand %p595_p4, %p870_p5  ;;  %s540_s13 = sshll.u32 %s206_s11, 4 }
  0x1b   : > { %p901_p7 = pnand %p579_p2, %p1063_p0  ;;  %s649_s14 = scalar_lea.vmem %s196_s9, 16 }
  0x1c   : > { %p650_p9 = scmp.ne.s32.totalorder %s196_s9, %s649_s14  ;;  %s656_s15 = scalar_lea.vmem %s196_s9, 32 }
  0x1d   : > { %p640_p8 = pneg %p901_p7  ;;  %p657_p12 = scmp.lt.s32.totalorder %s196_s9, %s196_s9 }
  0x1e   : > { %p658_p2 = scmp.lt.s32.totalorder %s656_s15, %s649_s14 }
  0x1f   : > { %p652_p10 = pnand %p650_p9, %p640_p8 }
  0x20   : > { %p659_p0 = por %p658_p2, %p657_p12 }
  0x21   : > { %p653_p1 = pneg %p652_p10 }
  0x23   : > { %p660_p11 = pnand %p659_p0, %p653_p1 }
  0x25   : > { %663 = shalt.err (!%p660_p11)
}
  0x26   : > { %582 = dma.hbm_to_vmem [thread:$0]  (!%p901_p7), %s1047_s0, 16, %s196_s9, [#allocation3]  }
  0x27   : > { %s541_s23 = sshll.u32 %s790_s21, 6  ;;  %s210_s25 = scalar_lea.vmem [#allocation5], %s540_s13 }
  0x28   : > { %s216_s26 = sshll.u32 %s210_s25, 4  ;;  %s923_s27 = scalar_lea.hbm %s1048_s1, %s541_s23  ;;  %s925_s26 = int_to_ptr.vmem [resolvable:$true] %s216_s26 }
  0x29   : > { %s927_s10 = scalar_lea.sflag [#allocation6], %s206_s11  ;;  %s664_s14 = scalar_lea.hbm %s923_s27, 256 }
  0x2a   : > { %p665_p4 = scmp.ne.s32.totalorder %s923_s27, %s664_s14  ;;  %p666_p5 = pneg %p908_p3 }
  0x2b   : > { %s669_s15 = scalar_lea.hbm %s1048_s1, 512  ;;  %p670_p1 = scmp.lt.s32.totalorder %s923_s27, %s1048_s1 }
  0x2c   : > { %p667_p11 = pnand %p666_p5, %p665_p4  ;;  %p671_p7 = scmp.lt.s32.totalorder %s669_s15, %s664_s14 }
  0x2e   : > { %p668_p12 = pneg %p667_p11  ;;  %p672_p8 = por %p671_p7, %p670_p1 }
  0x30   : > { %p673_p9 = pnand %p672_p8, %p668_p12 }
  0x32   : > { %676 = shalt.err (!%p673_p9)
}
  0x33   : > { %s677_s11 = scalar_lea.vmem %s925_s26, 256  ;;  %s793_s23 = smov [#allocation5]  }
  0x34   : > { %p678_p10 = scmp.ne.s32.totalorder %s925_s26, %s677_s11  ;;  %s682_s25 = sshll.u32 %s793_s23, 4  ;;  %s683_s25 = int_to_ptr.vmem [resolvable:$false] %s682_s25 }
  0x35   : > { %s684_s28 = scalar_lea.vmem %s683_s25, 512  ;;  %p685_p4 = scmp.lt.s32.totalorder %s925_s26, %s683_s25 }
  0x36   : > { %p680_p2 = pnand %p678_p10, %p666_p5  ;;  %p686_p11 = scmp.lt.s32.totalorder %s684_s28, %s677_s11 }
  0x38   : > { %p681_p0 = pneg %p680_p2  ;;  %p687_p6 = por %p686_p11, %p685_p4 }
  0x3a   : > { %p688_p13 = pnand %p687_p6, %p681_p0 }
  0x3c   : > { %691 = shalt.err (!%p688_p13)
}
  0x3d   : > { %s794_s8 = smov 128   ;;  %s795_s14 = smov 64  }
  0x3e   : > { %s796_s9 = smov 4   ;;  %p1066_p5 = scmp.ne.s32.totalorder %s1062_s7, 0 }
  0x3f   : > { %586 = dma.hbm_to_vmem [thread:$0]  (!%p908_p3), %s923_s27, 256, %s925_s26, %s927_s10, %s794_s8, %s795_s14, %s796_s9  }
  0x40   : > { %240 = sbr.rel (%p1066_p5) target bundleno = 292 (0x124), region = 36  ;;  %p1067_p12 = scmp.eq.s32.totalorder (!%p1066_p5), %s852_s22, 0 }
  0x45   : > { %761 = dma.done.wait (%p1067_p12), [#allocation3], 16   ;;  %p1068_p1 = pmov %p1067_p12 }
  0x46   : > { %s955_s13 = sand.u32 1, %s782_s19   ;;  %p1069_p6 = scmp.ne.s32.totalorder %s1059_s29, 0 }
  0x47   : > { %763 = vsyncadd (%p1068_p1), [#allocation3], 4294967280  ;;  %s544_s15 = sshll.u32 %s955_s13, 4  ;;  %s247_s16 = scalar_lea.sflag [#allocation6], %s955_s13 }
  0x48   : > { %s250_s17 = scalar_lea.vmem [#allocation5], %s544_s15 }
  0x49   : > { %765 = dma.done.wait (%p1069_p6), %s247_s16, 256  }
  0x4a   : > { %767 = vsyncadd (%p1069_p6), %s247_s16, 4294967040  ;;  %v797_v0 = vmov 0.0   ;;  %vm798_vm0 = vmmov 0   ;;  %v636_v1 = vld [vmem:[%s250_s17 + $0x8] sm:$0xff]   ;;  %v637_v2 = vld [vmem:[%s250_s17] sm:$0xff]   ;;  %vm319_vm1 = vcmask 261120  }
  0x4b   : > { %561 = vmatprep.subr.bf16.mxu0 %v797_v0  ;;  %565 = vmatprep.mubr.msk.bf16.mxu0 %vm798_vm0, %v797_v0  ;;  %v295_v3 = vld [vmem:[#allocation2] sm:$0x1]  ;;  %p288_p13 = scmp.lt.s32.totalorder %s852_s22, 1  ;;  %s545_s29 = sshll.u32 %s955_s13, 1 }
  0x4c   : > { %562 = vmatpush3.bf16.msra.mxu0 %v636_v1  ;;  %s554_s10 = sshll.u32 %s852_s22, 5  ;;  %s287_s11 = scalar_lea.vmem [#allocation8], %s545_s29 }
  0x4d   : > { %563 = vmatprep.subr.bf16.mxu0 %v797_v0  ;;  %s965_s27 = scalar_select %p288_p13, %s852_s22, 1 }
  0x4e   : > { %s402_s28 = scalar_lea.hbm %s1052_s5, %s554_s10  ;;  %s404_s8 = sshll.u32 %s287_s11, 4  ;;  %s405_s8 = int_to_ptr.vmem [resolvable:$true] %s404_s8 }
  0x4f   : > { %s293_s26 = scalar_lea.vmem %s1050_s3, %s965_s27  ;;  %s378_s14 = scalar_lea.sflag [#allocation9], %s955_s13 }
  0x50   : > { %564 = vmatpush3.bf16.msra.mxu0 %v637_v2  ;;  %v551_v4 = vld [vmem:[%s293_s26] ss:$0 sm:$0xff]  ;;  %s692_s9 = scalar_lea.vmem %s405_s8, 32  ;;  %p1070_p7 = scmp.ne.s32.totalorder %s1060_s30, 0 }
  0x51   : > { %371 = vst [vmem:[%s287_s11] sm:$0x3] %v551_v4  ;;  %p693_p3 = scmp.ne.s32.totalorder %s405_s8, %s692_s9  ;;  %s799_s15 = smov [#allocation8]  }
  0x52   : > { %s696_s16 = sshll.u32 %s799_s15, 4  ;;  %s697_s16 = int_to_ptr.vmem [resolvable:$false] %s696_s16 }
  0x53   : > { %566 = vmatmul.mubr.msk.bf16.vlgmr.msra.gmra.mxu0 %vm319_vm1, %v295_v3  ;;  %p694_p8 = pnand %p693_p3, %p1070_p7  ;;  %s698_s17 = scalar_lea.vmem %s697_s16, 64 }
  0x54   : > { %p699_p10 = scmp.lt.s32.totalorder %s405_s8, %s697_s16  ;;  %p700_p2 = scmp.lt.s32.totalorder %s698_s17, %s692_s9 }
  0x55   : > { %p695_p9 = pneg %p694_p8 }
  0x56   : > { %p701_p0 = por %p700_p2, %p699_p10 }
  0x58   : > { %p702_p4 = pnand %p701_p0, %p695_p9 }
  0x5a   : > { %705 = shalt.err (!%p702_p4)
}
  0x5b   : > { %s706_s7 = scalar_lea.hbm %s402_s28, 32  ;;  %s710_s11 = scalar_lea.hbm %s1052_s5, 64 }
  0x5c   : > { %p707_p11 = scmp.ne.s32.totalorder %s402_s28, %s706_s7  ;;  %p711_p1 = scmp.lt.s32.totalorder %s402_s28, %s1052_s5 }
  0x5d   : > { %p712_p6 = scmp.lt.s32.totalorder %s710_s11, %s706_s7 }
  0x5e   : > { %p708_p5 = pnand %p707_p11, %p1070_p7 }
  0x5f   : > { %p713_p13 = por %p712_p6, %p711_p1 }
  0x60   : > { %p709_p12 = pneg %p708_p5 }
  0x62   : > { %p714_p3 = pnand %p713_p13, %p709_p12 }
  0x64   : > { %717 = shalt.err (!%p714_p3)
}
  0x65   : > { %576 = dma.vmem_to_hbm [thread:$0]  (%p1070_p7), %s405_s8, 32, %s402_s28, %s378_s14  }
  0x66   : > { %s290_s16 = scalar_lea.vmem %s1049_s2, %s965_s27  ;;  %s280_s17 = scalar_lea.vmem [#allocation7], %s545_s29 }
  0x67   : > { %v547_v5 = vld [vmem:[%s290_s16] ss:$0 sm:$0xff]  ;;  %s391_s12 = sshll.u32 %s280_s17, 4  ;;  %s1004_s11 = scalar_lea.hbm %s1051_s4, %s554_s10  ;;  %s1006_s12 = int_to_ptr.vmem [resolvable:$true] %s391_s12 }
  0x68   : > { %s373_s27 = scalar_lea.sflag [#allocation4], %s955_s13  ;;  %s718_s28 = scalar_lea.vmem %s1006_s12, 32 }
  0x69   : > { %p719_p8 = scmp.ne.s32.totalorder %s1006_s12, %s718_s28  ;;  %s800_s22 = smov [#allocation7]  }
  0x6a   : > { %s722_s29 = sshll.u32 %s800_s22, 4  ;;  %s723_s29 = int_to_ptr.vmem [resolvable:$false] %s722_s29 }
  0x6b   : > { %p720_p9 = pnand %p719_p8, %p1070_p7  ;;  %s724_s8 = scalar_lea.vmem %s723_s29, 64 }
  0x6c   : > { %p725_p2 = scmp.lt.s32.totalorder %s1006_s12, %s723_s29  ;;  %p726_p0 = scmp.lt.s32.totalorder %s724_s8, %s718_s28 }
  0x6d   : > { %p721_p10 = pneg %p720_p9 }
  0x6e   : > { %p727_p4 = por %p726_p0, %p725_p2 }
  0x70   : > { %p728_p11 = pnand %p727_p4, %p721_p10 }
 0x113   : > { %v357_v6 = vpop.f32.mrf.mxu0 }
 0x114   : > { %v358_v7 = vadd.f32 %v547_v5, %v357_v6 }
 0x115   : > { %v567_v8 = vpop.f32.mrf.mxu0 }
 0x116   : > { %363 = vst [vmem:[%s280_s17] sm:$0x3] %v358_v7 }
 0x117   : > { %v360_v9 = vpop.f32.mrf.mxu0 }
 0x118   : > { %731 = shalt.err (!%p728_p11)
}
 0x119   : > { %s732_s10 = scalar_lea.hbm %s1004_s11, 32  ;;  %s736_s23 = scalar_lea.hbm %s1051_s4, 64 }
 0x11a   : > { %p733_p5 = scmp.ne.s32.totalorder %s1004_s11, %s732_s10  ;;  %p737_p6 = scmp.lt.s32.totalorder %s1004_s11, %s1051_s4 }
 0x11b   : > { %p738_p13 = scmp.lt.s32.totalorder %s736_s23, %s732_s10 }
 0x11c   : > { %p734_p12 = pnand %p733_p5, %p1070_p7 }
 0x11d   : > { %p739_p3 = por %p738_p13, %p737_p6 }
 0x11e   : > { %p735_p1 = pneg %p734_p12 }
 0x120   : > { %p740_p8 = pnand %p739_p3, %p735_p1 }
 0x122   : > { %743 = shalt.err (!%p740_p8)
}
 0x123   : > { %575 = dma.vmem_to_hbm [thread:$0]  (%p1070_p7), %s1006_s12, 32, %s1004_s11, %s373_s27   ;;  %v568_v10 = vpop.f32.mrf.mxu0 }
 0x124 PF: > { %s416_s15 = sand.u32 1, %s778_s18   ;;  %p1071_p9 = scmp.ne.s32.totalorder %s1061_s6, 0 }
 0x125   : > { %p1072_p10 = scmp.ge.s32.totalorder %s790_s21, 2  ;;  %s417_s16 = scalar_lea.sflag [#allocation4], %s416_s15 }
 0x127   : > { %p588_p2 = pnand %p1072_p10, %p1071_p9 }
 0x129   : > { %p589_p0 = pneg %p588_p2 }
 0x12b   : > { %769 = dma.done.wait (%p589_p0), %s417_s16, 32  }
 0x12c   : > { %771 = vsyncadd (%p589_p0), %s417_s16, 4294967264  ;;  %s426_s17 = scalar_lea.sflag [#allocation9], %s416_s15 }
 0x12d   : > { %773 = dma.done.wait (%p589_p0), %s426_s17, 32  }
 0x12e   : > { %775 = vsyncadd (%p589_p0), %s426_s17, 4294967264  ;;  %s1073_s30 = sld [smem:[#allocation14_spill]]  ;;  %p23_p7 = scmp.ge.s32.totalorder %s856_s24, 4  }
 0x12f   : > { %s1074_s18 = smov %s782_s19  ;;  %s1075_s19 = smov %s786_s20 }
 0x130   : > { %s1077_s21 = smov %s856_s24  ;;  %25 = sbr.rel (!%p23_p7) target bundleno = 8 (0x8), region = 109 }
 0x134   : > { %s1076_s20 = smov %s1073_s30 }
 0x135   :  { %431 = vsyncpa [#allocation3], 1 }
 0x136   :  { %433 = vsyncpa [#allocation3 + $0x1], 1 }
 0x137   :  { %434 = vsyncpa [#allocation6], 1 }
 0x138   :  { %436 = vsyncpa [#allocation6 + $0x1], 1 }
 0x139   :  { %437 = vsyncpa [#allocation4], 1 }
 0x13a   :  { %439 = vsyncpa [#allocation4 + $0x1], 1 }
 0x13b   :  { %440 = vsyncpa [#allocation9], 1 }
 0x13c   :  { %442 = vsyncpa [#allocation9 + $0x1], 1 }

</bundles_post_ra>
